<compile_context>
chip_gen: v6e
topology: v6e:2x2x1
jax: 0.10.0
libtpu: 0.0.40
codegen_flags: <defaults>
</compile_context>

<pallas_src>
import jax
import jax.numpy as jnp
from jax import lax
from jax.experimental import pallas as pl
from jax.experimental.pallas import tpu as pltpu

_EPS = 1e-6                              # F.pairwise_distance default eps (added to the difference)
_TARGET_TILE_BYTES = 4 * 1024 * 1024     # per-input DMA tile (native dtype)
_TARGET_CHUNK_F32_BYTES = 256 * 1024     # per-input in-flight f32 working chunk


def _round_down(x, m):
    return (x // m) * m


def _make_kernel(B, tb, cr, D, tiles_per_core, need_mask):
    """Build the kernel closure over all-static shape/tiling parameters."""
    n_chunks = tb // cr
    fold_to_8 = (cr % 8 == 0)
    two_eps = 2.0 * _EPS

    def fold_chunk(out_ref, q_ref, p_ref, n_ref, tile_row0, r0):
        q = q_ref[pl.ds(r0, cr), :].astype(jnp.float32)
        p = p_ref[pl.ds(r0, cr), :].astype(jnp.float32)
        n = n_ref[pl.ds(r0, cr), :].astype(jnp.float32)
        # dpos^2 - dneg^2  ==  (n - p) * (2q - p - n + 2*eps)   (factored form)
        diff = (n - p) * (2.0 * q - p - n + two_eps)            # (cr, D) f32
        if need_mask:
            # Mask rows whose global index >= B (ragged tail / over-provisioned
            # tiles). Select (not multiply): safe even if OOB data is Inf/NaN.
            rows = tile_row0 + r0 + lax.broadcasted_iota(jnp.int32, (cr, 1), 0)
            diff = jnp.where(rows < B, diff, 0.0)
        if fold_to_8:
            # Fold rows into the resident (8, D) slab: splits only the sublane
            # axis -> pure elementwise VPU adds, no cross-lane reduce here.
            out_ref[...] += jnp.sum(diff.reshape(cr // 8, 8, D), axis=0)
        else:
            # Tiny-batch path (tb == cr == B < 8): slab has exactly cr rows.
            out_ref[...] += diff

    def kernel(q_ref, p_ref, n_ref, out_ref):
        c = pl.program_id(0)   # core axis ("parallel": megacore split on v7x)
        i = pl.program_id(1)   # batch-tile axis ("arbitrary": reduction)

        @pl.when(i == 0)
        def _init():
            out_ref[...] = jnp.zeros_like(out_ref)

        tile_row0 = (c * tiles_per_core + i) * tb

        if n_chunks == 1:
            fold_chunk(out_ref, q_ref, p_ref, n_ref, tile_row0, 0)
        else:
            def body(s, carry):
                fold_chunk(out_ref, q_ref, p_ref, n_ref, tile_row0,
                           pl.multiple_of(s * cr, 8))
                return carry
            lax.fori_loop(0, n_chunks, body, 0)

    return kernel


def contrastive_loss(query, positive, negative, margin=5.0, *, block_rows=None):
    """query/positive/negative: (B, D) float arrays (any float dtype). Scalar f32 loss."""
    assert query.shape == positive.shape == negative.shape and query.ndim == 2
    B, D = query.shape
    assert B >= 1 and D >= 1
    itemsize = query.dtype.itemsize

    # ---- static tile / chunk selection ----
    if B < 8:
        tb = cr = B                               # full-extent block (divisibility rule waived)
    else:
        bgrain = _round_down(B, 8)                # largest 8-aligned row count <= B
        rows_target = block_rows if block_rows is not None \
            else max(8, _TARGET_TILE_BYTES // (D * itemsize))
        tb = max(8, min(_round_down(rows_target, 8), bgrain))
        # Inner chunk bounds the f32 temporaries; must divide the DMA tile.
        cr = max(8, min(_round_down(_TARGET_CHUNK_F32_BYTES // (D * 4), 8), tb, 512))
        tb = max(cr, _round_down(tb, cr))

    num_tiles = -(-B // tb)
    num_cores = 2 if num_tiles >= 2 else 1        # 2-way split: both TCs on v7x, serial elsewhere
    tiles_per_core = -(-num_tiles // num_cores)
    need_mask = num_cores * tiles_per_core * tb > B
    slab_rows = 8 if cr % 8 == 0 else cr          # per-core partial-slab height

    kernel = _make_kernel(B, tb, cr, D, tiles_per_core, need_mask)

    def row_map(c, i):
        return (c * tiles_per_core + i, 0)

    in_spec = pl.BlockSpec((tb, D), row_map)
    # Per-core (slab_rows, D) f32 partial, resident across the reduction axis.
    out_spec = pl.BlockSpec((None, slab_rows, D), lambda c, i: (c, 0, 0))

    # Right-sized scoped VMEM: 3 inputs x 2 pipeline buffers + small temporaries
    # + slack; never the full physical VMEM of a v7x core.
    tile_bytes = tb * D * itemsize
    vmem_limit = int(max(16 << 20, min(32 << 20, 6 * tile_bytes + (6 << 20))))

    partials = pl.pallas_call(
        kernel,
        out_shape=jax.ShapeDtypeStruct((num_cores, slab_rows, D), jnp.float32),
        grid=(num_cores, tiles_per_core),
        in_specs=[in_spec, in_spec, in_spec],
        out_specs=out_spec,
        compiler_params=pltpu.CompilerParams(
            dimension_semantics=("parallel", "arbitrary"),
            vmem_limit_bytes=vmem_limit,
        ),
    )(query, positive, negative)

    # Tiny final reduce + margin + clamp in the wrapper (combines per-core partials).
    total = jnp.sum(partials)
    return jnp.maximum(total + jnp.float32(margin), jnp.float32(0.0))


def _ref_loss(q, p, n, margin):
    # Pure-JAX mirror of the PyTorch math (f32 accumulation).
    q, p, n = (x.astype(jnp.float32) for x in (q, p, n))
    dp = jnp.sqrt(jnp.sum((q - p + _EPS) ** 2, axis=-1))
    dn = jnp.sqrt(jnp.sum((q - n + _EPS) ** 2, axis=-1))
    return jnp.maximum(jnp.sum(dp ** 2 - dn ** 2) + margin, 0.0)


if __name__ == "__main__":
    key = jax.random.PRNGKey(0)

    # Case 1: aligned shapes -> single tile, single core, no masking.
    k1, k2, k3, key = jax.random.split(key, 4)
    B, D = 8, 128
    q = jax.random.normal(k1, (B, D), dtype=jnp.float32)
    p = jax.random.normal(k2, (B, D), dtype=jnp.float32)
    n = jax.random.normal(k3, (B, D), dtype=jnp.float32)
    loss = contrastive_loss(q, p, n, margin=5.0)
    jax.block_until_ready(loss)
    ref = _ref_loss(q, p, n, 5.0)
    assert jnp.allclose(loss, ref, rtol=1e-4, atol=1e-2), (loss, ref)

    # Case 2: ragged batch + forced small tile -> multi-tile, 2-way core split,
    # in-kernel tail masking, D not a multiple of 128 (full-extent lane block).
    k1, k2, k3, key = jax.random.split(key, 4)
    B, D = 30, 96
    q = jax.random.normal(k1, (B, D), dtype=jnp.float32)
    p = jax.random.normal(k2, (B, D), dtype=jnp.float32)
    n = jax.random.normal(k3, (B, D), dtype=jnp.float32)
    loss = contrastive_loss(q, p, n, margin=5.0, block_rows=8)
    jax.block_until_ready(loss)
    ref = _ref_loss(q, p, n, 5.0)
    assert jnp.allclose(loss, ref, rtol=1e-4, atol=1e-2), (loss, ref)

    # Case 3: bf16 inputs stream in native dtype (half the HBM read bytes),
    # upcast to f32 inside the kernel.
    k1, k2, k3, key = jax.random.split(key, 4)
    B, D = 24, 64
    q = jax.random.normal(k1, (B, D), dtype=jnp.bfloat16)
    p = jax.random.normal(k2, (B, D), dtype=jnp.bfloat16)
    n = jax.random.normal(k3, (B, D), dtype=jnp.bfloat16)
    loss = contrastive_loss(q, p, n, margin=5.0)
    jax.block_until_ready(loss)
    ref = _ref_loss(q, p, n, 5.0)
    assert jnp.allclose(loss, ref, rtol=1e-3, atol=5e-2), (loss, ref)

    # Case 4: tiny batch (B < 8) -> full-extent block / short-slab path.
    k1, k2, k3, key = jax.random.split(key, 4)
    B, D = 4, 32
    q = jax.random.normal(k1, (B, D), dtype=jnp.float32)
    p = jax.random.normal(k2, (B, D), dtype=jnp.float32)
    n = jax.random.normal(k3, (B, D), dtype=jnp.float32)
    loss = contrastive_loss(q, p, n, margin=5.0)
    jax.block_until_ready(loss)
    ref = _ref_loss(q, p, n, 5.0)
    assert jnp.allclose(loss, ref, rtol=1e-4, atol=1e-2), (loss, ref)

    print("KERNEL_OK")
</pallas_src>

<mosaic_0001>
module attributes {stable_mosaic.version = 11 : i64} {
  func.func @kernel(%arg0: i32, %arg1: i32, %arg2: memref<8x128xf32, #tpu.memory_space<vmem>>, %arg3: memref<8x128xf32, #tpu.memory_space<vmem>>, %arg4: memref<8x128xf32, #tpu.memory_space<vmem>>, %arg5: memref<1x8x128xf32, #tpu.memory_space<vmem>>) attributes {dimension_semantics = [#tpu.dimension_semantics<parallel>, #tpu.dimension_semantics<arbitrary>], iteration_bounds = array<i64: 1, 1>, scalar_prefetch = 0 : i64, scratch_operands = 0 : i64, tpu.core_type = #tpu.core_type<tc>, window_params = [{transform_indices = @transform_0, window_bounds = array<i64: 8, 128>}, {transform_indices = @transform_1, window_bounds = array<i64: 8, 128>}, {transform_indices = @transform_2, window_bounds = array<i64: 8, 128>}, {transform_indices = @transform_3, window_bounds = array<i64: 1, 8, 128>}]} {
    %c0_i32 = arith.constant 0 : i32
    %0 = arith.cmpi eq, %arg1, %c0_i32 : i32
    %1 = arith.extui %0 : i1 to i32
    %c0_i32_0 = arith.constant 0 : i32
    %2 = arith.cmpi ne, %1, %c0_i32_0 : i32
    scf.if %2 {
      %cst_14 = arith.constant 0.000000e+00 : f32
      %22 = vector.broadcast %cst_14 : f32 to vector<8x128xf32>
      %c0_15 = arith.constant 0 : index
      %c0_16 = arith.constant 0 : index
      %c0_17 = arith.constant 0 : index
      %23 = vector.load %arg5[%c0_15, %c0_16, %c0_17] : memref<1x8x128xf32, #tpu.memory_space<vmem>>, vector<1x8x128xf32>
      %24 = vector.shape_cast %23 : vector<1x8x128xf32> to vector<8x128xf32>
      %25 = vector.shape_cast %22 : vector<8x128xf32> to vector<1x8x128xf32>
      tpu.vector_store %arg5[%c0_15, %c0_16, %c0_17], %25 {strides = array<i32>} : memref<1x8x128xf32, #tpu.memory_space<vmem>>, vector<1x8x128xf32>,
    } else {
    }
    %c0 = arith.constant 0 : index
    %c0_1 = arith.constant 0 : index
    %3 = vector.load %arg2[%c0, %c0_1] : memref<8x128xf32, #tpu.memory_space<vmem>>, vector<8x128xf32>
    %c0_2 = arith.constant 0 : index
    %c0_3 = arith.constant 0 : index
    %4 = vector.load %arg3[%c0_2, %c0_3] : memref<8x128xf32, #tpu.memory_space<vmem>>, vector<8x128xf32>
    %c0_4 = arith.constant 0 : index
    %c0_5 = arith.constant 0 : index
    %5 = vector.load %arg4[%c0_4, %c0_5] : memref<8x128xf32, #tpu.memory_space<vmem>>, vector<8x128xf32>
    %6 = arith.subf %5, %4 : vector<8x128xf32>
    %cst = arith.constant 2.000000e+00 : f32
    %7 = vector.broadcast %cst : f32 to vector<8x128xf32>
    %8 = arith.mulf %7, %3 : vector<8x128xf32>
    %9 = arith.subf %8, %4 : vector<8x128xf32>
    %10 = arith.subf %9, %5 : vector<8x128xf32>
    %cst_6 = arith.constant 2.000000e-06 : f32
    %11 = vector.broadcast %cst_6 : f32 to vector<8x128xf32>
    %12 = arith.addf %10, %11 : vector<8x128xf32>
    %13 = arith.mulf %6, %12 : vector<8x128xf32>
    %c0_7 = arith.constant 0 : index
    %c0_8 = arith.constant 0 : index
    %c0_9 = arith.constant 0 : index
    %14 = vector.load %arg5[%c0_7, %c0_8, %c0_9] : memref<1x8x128xf32, #tpu.memory_space<vmem>>, vector<1x8x128xf32>
    %15 = vector.shape_cast %14 : vector<1x8x128xf32> to vector<8x128xf32>
    %16 = vector.shape_cast %13 : vector<8x128xf32> to vector<1x8x128xf32>
    %cst_10 = arith.constant dense<0.000000e+00> : vector<8x128xf32>
    %17 = vector.multi_reduction <add>, %16, %cst_10 [0] : vector<1x8x128xf32> to vector<8x128xf32>
    %18 = arith.addf %15, %17 : vector<8x128xf32>
    %c0_11 = arith.constant 0 : index
    %c0_12 = arith.constant 0 : index
    %c0_13 = arith.constant 0 : index
    %19 = vector.load %arg5[%c0_11, %c0_12, %c0_13] : memref<1x8x128xf32, #tpu.memory_space<vmem>>, vector<1x8x128xf32>
    %20 = vector.shape_cast %19 : vector<1x8x128xf32> to vector<8x128xf32>
    %21 = vector.shape_cast %18 : vector<8x128xf32> to vector<1x8x128xf32>
    tpu.vector_store %arg5[%c0_11, %c0_12, %c0_13], %21 {strides = array<i32>} : memref<1x8x128xf32, #tpu.memory_space<vmem>>, vector<1x8x128xf32>,
    return
  }
  func.func @transform_0(%arg0: i32, %arg1: i32) -> (i32, i32) {
    %c1_i32 = arith.constant 1 : i32
    %0 = arith.muli %arg0, %c1_i32 : i32
    %1 = arith.addi %0, %arg1 : i32
    %c0_i32 = arith.constant 0 : i32
    %c0_i32_0 = arith.constant 0 : i32
    return %1, %c0_i32 : i32, i32
  }
  func.func @transform_1(%arg0: i32, %arg1: i32) -> (i32, i32) {
    %c1_i32 = arith.constant 1 : i32
    %0 = arith.muli %arg0, %c1_i32 : i32
    %1 = arith.addi %0, %arg1 : i32
    %c0_i32 = arith.constant 0 : i32
    %c0_i32_0 = arith.constant 0 : i32
    return %1, %c0_i32 : i32, i32
  }
  func.func @transform_2(%arg0: i32, %arg1: i32) -> (i32, i32) {
    %c1_i32 = arith.constant 1 : i32
    %0 = arith.muli %arg0, %c1_i32 : i32
    %1 = arith.addi %0, %arg1 : i32
    %c0_i32 = arith.constant 0 : i32
    %c0_i32_0 = arith.constant 0 : i32
    return %1, %c0_i32 : i32, i32
  }
  func.func @transform_3(%arg0: i32, %arg1: i32) -> (i32, i32, i32) {
    %c0_i32 = arith.constant 0 : i32
    %c0_i32_0 = arith.constant 0 : i32
    %c0_i32_1 = arith.constant 0 : i32
    return %arg0, %c0_i32, %c0_i32_0 : i32, i32, i32
  }
}

</mosaic_0001>

<bundles_post_ra>
// kernel: tpu_custom_call.1
= control target key start
LH: loop header
LB: loop body
LE: loop exit
PB: predicated region body
PF: predicated region fallthrough
CT: control target
= control target key end

     0   :  { %8 = vsyncpa [#allocation3], 0  ;;  %s223_s0 = inlined_call_operand.hbm [shape: f32[8,128], index: 0, kind: input, shape index: {}]   ;;  %s224_s1 = inlined_call_operand.hbm [shape: f32[8,128], index: 1, kind: input, shape index: {}]   ;;  %s225_s2 = inlined_call_operand.hbm [shape: f32[8,128], index: 2, kind: input, shape index: {}]   ;;  %s226_s3 = inlined_call_operand.hbm [shape: f32[1,8,128], index: 3, kind: output, shape index: {}]  }
   0x1   :  { %9 = vsyncpa [#allocation6], 0 }
   0x2   :  { %10 = vsyncpa [#allocation4], 0  ;;  %s187_s12 = smov [#allocation5]   ;;  %s188_s14 = smov [#allocation2]  }
   0x3   :  { %s33_s13 = sshll.u32 %s187_s12, 4  ;;  %s20_s15 = sshll.u32 %s188_s14, 4  ;;  %s34_s13 = int_to_ptr.vmem [resolvable:$true] %s33_s13  ;;  %s21_s15 = int_to_ptr.vmem [resolvable:$true] %s20_s15 }
   0x4   :  { %s109_s16 = scalar_lea.vmem %s34_s13, 128  ;;  %p114_p1 = scmp.lt.s32.totalorder %s34_s13, %s34_s13 }
   0x5   :  { %p110_p0 = scmp.ne.s32.totalorder %s34_s13, %s109_s16  ;;  %p115_p2 = scmp.lt.s32.totalorder %s109_s16, %s109_s16 }
   0x7   :  { %p116_p3 = por %p115_p2, %p114_p1 }
   0x9   :  { %p117_p4 = pnand %p116_p3, %p110_p0 }
   0xb   :  { %120 = shalt.err (!%p117_p4)
}
   0xc   :  { %36 = dma.hbm_to_vmem [thread:$0]  %s224_s1, 128, %s34_s13, [#allocation6]  }
   0xd   :  { %s129_s19 = scalar_lea.vmem %s21_s15, 128  ;;  %p134_p6 = scmp.lt.s32.totalorder %s21_s15, %s21_s15 }
   0xe   :  { %p130_p5 = scmp.ne.s32.totalorder %s21_s15, %s129_s19  ;;  %p135_p7 = scmp.lt.s32.totalorder %s129_s19, %s129_s19 }
  0x10   :  { %p136_p8 = por %p135_p7, %p134_p6 }
  0x12   :  { %p137_p9 = pnand %p136_p8, %p130_p5 }
  0x14   :  { %140 = shalt.err (!%p137_p9)
}
  0x15   :  { %23 = dma.hbm_to_vmem [thread:$0]  %s223_s0, 128, %s21_s15, [#allocation3]  }
  0x16   :  { %s189_s22 = smov [#allocation7]  }
  0x17   :  { %s46_s23 = sshll.u32 %s189_s22, 4  ;;  %s47_s23 = int_to_ptr.vmem [resolvable:$true] %s46_s23 }
  0x18   :  { %s149_s24 = scalar_lea.vmem %s47_s23, 128  ;;  %p154_p11 = scmp.lt.s32.totalorder %s47_s23, %s47_s23 }
  0x19   :  { %p150_p10 = scmp.ne.s32.totalorder %s47_s23, %s149_s24  ;;  %p155_p12 = scmp.lt.s32.totalorder %s149_s24, %s149_s24 }
  0x1b   :  { %p156_p13 = por %p155_p12, %p154_p11 }
  0x1d   :  { %p157_p0 = pnand %p156_p13, %p150_p10 }
  0x1f   :  { %160 = shalt.err (!%p157_p0)
}
  0x20   :  { %49 = dma.hbm_to_vmem [thread:$0]  %s225_s2, 128, %s47_s23, [#allocation6]  }
  0x21   :  { %181 = dma.done.wait [#allocation3], 128  }
  0x22   :  { %182 = vsyncadd [#allocation3], 4294967168 }
  0x23   :  { %183 = dma.done.wait [#allocation6], 256  }
  0x24   :  { %184 = vsyncadd [#allocation6], 4294967040  ;;  %v67_v0 = vld [vmem:[#allocation2] sm:$0xff]  ;;  %v68_v1 = vld [vmem:[#allocation5] sm:$0xff]  ;;  %s190_s0 = smov [#allocation8]  }
  0x25   :  { %v71_v2 = vmul.f32 2.0, %v67_v0  ;;  %v69_v3 = vld [vmem:[#allocation7] sm:$0xff]  ;;  %s86_s26 = sshll.u32 %s190_s0, 4  ;;  %s87_s26 = int_to_ptr.vmem [resolvable:$true] %s86_s26 }
  0x26   :  { %v70_v5 = vsub.f32 %v69_v3, %v68_v1  ;;  %s161_s27 = scalar_lea.vmem %s87_s26, 128  ;;  %p166_p2 = scmp.lt.s32.totalorder %s87_s26, %s87_s26 }
  0x27   :  { %v72_v4 = vsub.f32 %v71_v2, %v68_v1  ;;  %p162_p1 = scmp.ne.s32.totalorder %s87_s26, %s161_s27  ;;  %p167_p3 = scmp.lt.s32.totalorder %s161_s27, %s161_s27 }
  0x29   :  { %v73_v6 = vsub.f32 %v72_v4, %v69_v3  ;;  %p168_p4 = por %p167_p3, %p166_p2 }
  0x2b   :  { %v74_v7 = vadd.f32 2e-06, %v73_v6  ;;  %p169_p5 = pnand %p168_p4, %p162_p1 }
  0x2d   :  { %v75_v8 = vmul.f32 %v74_v7, %v70_v5 }
  0x2f   :  { %79 = vst [vmem:[#allocation8] sm:$0xff] %v75_v8 }
  0x30   :  { %172 = shalt.err (!%p169_p5)
}
  0x31   :  { %89 = dma.vmem_to_hbm [thread:$0]  %s87_s26, 128, %s226_s3, [#allocation4]  }
  0x32   :  { %185 = dma.done.wait [#allocation4], 128  }
  0x33   :  { %186 = vsyncadd [#allocation4], 4294967168 }
  0x34   :  { %93 = vsyncpa [#allocation3], 1 }
  0x35   :  { %94 = vsyncpa [#allocation6], 1 }
  0x36   :  { %95 = vsyncpa [#allocation4], 1 }

</bundles_post_ra>
